<compile_context>
chip_gen: v5e
topology: v5e:2x2
jax: 0.10.0
libtpu: 0.0.40
codegen_flags: <defaults>
</compile_context>

<pallas_src>
import jax
import jax.numpy as jnp
from jax import lax
from jax.experimental import pallas as pl
from jax.experimental.pallas import tpu as pltpu

LANE = 128
SUBLANE = 8
MAX_TILE_ROWS = 2048  # (2048,128) f32 = 1 MiB per tile per input


def _to_lane_tiles(x):
    """Flatten (native dtype); zero-pad only if needed to a multiple of 8*128;
    reshape to a lane-dense (R, 128) array. Returns (array2d, true_elem_count)."""
    flat = jnp.ravel(x)
    n = flat.shape[0]
    pad = (-n) % (SUBLANE * LANE)
    if pad:
        flat = jnp.pad(flat, (0, pad))
    return flat.reshape(-1, LANE), n


def _make_kernel(tile_rows, tiles_per_core, n_rows, n_enc, n_con, n_adv,
                 wadv, wcon, wenc):
    con_scale = float(wcon) / float(n_con)
    enc_scale = float(wenc) / float(n_enc)
    adv_scale = float(wadv) / float(n_adv)

    def kernel(li_ref, lo_ref, pr_ref, pf_ref, im_ref, fk_ref, out_ref, acc_ref):
        p = pl.program_id(0)            # "parallel" axis (megacore split)
        i = pl.program_id(1)            # "arbitrary" reduction axis
        n_i = pl.num_programs(1)

        @pl.when(i == 0)
        def _init():
            acc_ref[...] = jnp.zeros_like(acc_ref)

        # ---- contextual (L1) partial sums for this core's tile -------------
        logical_tile = p * tiles_per_core + i
        row_ids = lax.broadcasted_iota(jnp.int32, (tile_rows, LANE), 0)
        valid = (logical_tile * tile_rows + row_ids) < n_rows
        d = im_ref[...].astype(jnp.float32) - fk_ref[...].astype(jnp.float32)
        contrib = jnp.where(valid, jnp.abs(d), jnp.float32(0.0))
        # fold (tile_rows,128) into the resident (8,128) accumulator: VPU-only
        acc_ref[...] += jnp.sum(contrib.reshape(-1, SUBLANE, LANE), axis=0)

        # ---- finalize on the last step of this core -------------------------
        @pl.when(i == n_i - 1)
        def _finalize():
            tile = acc_ref[...] * con_scale

            # tiny resident tensors: SmoothL1 (beta=1) + MSE, zero pads add 0
            de = li_ref[...].astype(jnp.float32) - lo_ref[...].astype(jnp.float32)
            ae = jnp.abs(de)
            enc_sum = jnp.sum(jnp.where(ae < 1.0, 0.5 * de * de, ae - 0.5))
            da = pr_ref[...].astype(jnp.float32) - pf_ref[...].astype(jnp.float32)
            adv_sum = jnp.sum(da * da)

            # only core/slice p==0 contributes the enc/adv scalars (once)
            extra = jnp.where(p == 0,
                              adv_scale * adv_sum + enc_scale * enc_sum,
                              jnp.float32(0.0))
            r8 = lax.broadcasted_iota(jnp.int32, (SUBLANE, LANE), 0)
            l8 = lax.broadcasted_iota(jnp.int32, (SUBLANE, LANE), 1)
            first = (r8 == 0) & (l8 == 0)
            out_ref[0] = tile + jnp.where(first, extra, jnp.float32(0.0))

    return kernel


def generator_loss(latent_i, latent_o, images, fake, pred_real, pred_fake,
                   wadv=1, wcon=50, wenc=1):
    """Pallas implementation of GANomaly GeneratorLoss.forward (mean losses)."""
    li2d, n_enc = _to_lane_tiles(latent_i)
    lo2d, _ = _to_lane_tiles(latent_o)
    pr2d, n_adv = _to_lane_tiles(pred_real)
    pf2d, _ = _to_lane_tiles(pred_fake)
    im2d, n_con = _to_lane_tiles(images)
    fk2d, _ = _to_lane_tiles(fake)

    n_rows = im2d.shape[0]                       # multiple of 8
    tile_rows = min(MAX_TILE_ROWS, n_rows)       # multiple of 8
    n_tiles = (n_rows + tile_rows - 1) // tile_rows
    tiles_per_core = (n_tiles + 1) // 2
    grid = (2, tiles_per_core)                   # ("parallel", "arbitrary")

    # Clamp the block index so the DMA stays in bounds; the in-kernel row mask
    # zeroes out any duplicated / out-of-range logical tile.
    def big_index_map(p, i):
        return (jnp.minimum(p * tiles_per_core + i, n_tiles - 1), 0)

    def const_index_map(p, i):
        return (0, 0)

    kernel = _make_kernel(tile_rows, tiles_per_core, n_rows,
                          n_enc, n_con, n_adv,
                          float(wadv), float(wcon), float(wenc))

    out = pl.pallas_call(
        kernel,
        out_shape=jax.ShapeDtypeStruct((2, SUBLANE, LANE), jnp.float32),
        grid_spec=pltpu.PrefetchScalarGridSpec(
            num_scalar_prefetch=0,
            grid=grid,
            in_specs=[
                # tiny tensors: full blocks, constant index_map -> resident,
                # DMA'd once (no per-step re-fetch)
                pl.BlockSpec(li2d.shape, const_index_map),
                pl.BlockSpec(lo2d.shape, const_index_map),
                pl.BlockSpec(pr2d.shape, const_index_map),
                pl.BlockSpec(pf2d.shape, const_index_map),
                # streamed contextual inputs (default 2-deep pipelining;
                # bump via pipeline_mode=pl.Buffered(3) only if profiles show
                # exposed DMA)
                pl.BlockSpec((tile_rows, LANE), big_index_map),
                pl.BlockSpec((tile_rows, LANE), big_index_map),
            ],
            out_specs=pl.BlockSpec((1, SUBLANE, LANE), lambda p, i: (p, 0, 0)),
            scratch_shapes=[pltpu.VMEM((SUBLANE, LANE), jnp.float32)],
        ),
        compiler_params=pltpu.CompilerParams(
            dimension_semantics=("parallel", "arbitrary"),
            vmem_limit_bytes=32 * 1024 * 1024,   # explicit: safe on v5e/v6e/v7x
        ),
    )(li2d, lo2d, pr2d, pf2d, im2d, fk2d)

    # single tiny cross-lane reduction (2*8*128 elements) in the wrapper
    return jnp.sum(out)


def _reference_loss(latent_i, latent_o, images, fake, pred_real, pred_fake,
                    wadv=1, wcon=50, wenc=1):
    d = latent_i.astype(jnp.float32) - latent_o.astype(jnp.float32)
    ad = jnp.abs(d)
    enc = jnp.mean(jnp.where(ad < 1.0, 0.5 * d * d, ad - 0.5))
    con = jnp.mean(jnp.abs(images.astype(jnp.float32) - fake.astype(jnp.float32)))
    adv = jnp.mean((pred_real.astype(jnp.float32) - pred_fake.astype(jnp.float32)) ** 2)
    return wadv * adv + wcon * con + wenc * enc


if __name__ == "__main__":
    key = jax.random.PRNGKey(0)
    k1, k2, k3, k4, k5, k6 = jax.random.split(key, 6)

    # Small shapes consistent with GANomaly's forward signature.
    latent_i = jax.random.normal(k1, (2, 100), dtype=jnp.float32)
    latent_o = jax.random.normal(k2, (2, 100), dtype=jnp.float32)
    images = jax.random.normal(k3, (2, 3, 16, 16), dtype=jnp.float32)   # NCHW
    fake = jax.random.normal(k4, (2, 3, 16, 16), dtype=jnp.float32)     # NCHW
    pred_real = jax.random.normal(k5, (2, 1), dtype=jnp.float32)
    pred_fake = jax.random.normal(k6, (2, 1), dtype=jnp.float32)

    loss = generator_loss(latent_i, latent_o, images, fake, pred_real, pred_fake)
    loss = jax.block_until_ready(loss)

    ref = _reference_loss(latent_i, latent_o, images, fake, pred_real, pred_fake)
    assert jnp.allclose(loss, ref, rtol=1e-5, atol=1e-5), (loss, ref)

    print("KERNEL_OK")
</pallas_src>

<mosaic_0001>
module attributes {stable_mosaic.version = 11 : i64} {
  func.func @kernel(%arg0: i32, %arg1: i32, %arg2: memref<8x128xf32, #tpu.memory_space<vmem>>, %arg3: memref<8x128xf32, #tpu.memory_space<vmem>>, %arg4: memref<8x128xf32, #tpu.memory_space<vmem>>, %arg5: memref<8x128xf32, #tpu.memory_space<vmem>>, %arg6: memref<16x128xf32, #tpu.memory_space<vmem>>, %arg7: memref<16x128xf32, #tpu.memory_space<vmem>>, %arg8: memref<1x8x128xf32, #tpu.memory_space<vmem>>, %arg9: memref<8x128xf32, #tpu.memory_space<vmem>>) attributes {dimension_semantics = [#tpu.dimension_semantics<parallel>, #tpu.dimension_semantics<arbitrary>], iteration_bounds = array<i64: 2, 1>, scalar_prefetch = 0 : i64, scratch_operands = 1 : i64, tpu.core_type = #tpu.core_type<tc>, window_params = [{pipeline_mode = #tpu.pipeline_mode<synchronous>, transform_indices = @transform_0, window_bounds = array<i64: 8, 128>}, {pipeline_mode = #tpu.pipeline_mode<synchronous>, transform_indices = @transform_1, window_bounds = array<i64: 8, 128>}, {pipeline_mode = #tpu.pipeline_mode<synchronous>, transform_indices = @transform_2, window_bounds = array<i64: 8, 128>}, {pipeline_mode = #tpu.pipeline_mode<synchronous>, transform_indices = @transform_3, window_bounds = array<i64: 8, 128>}, {transform_indices = @transform_4, window_bounds = array<i64: 16, 128>}, {transform_indices = @transform_5, window_bounds = array<i64: 16, 128>}, {transform_indices = @transform_6, window_bounds = array<i64: 1, 8, 128>}]} {
    %c0_i32 = arith.constant 0 : i32
    %0 = arith.cmpi eq, %arg1, %c0_i32 : i32
    %1 = arith.extui %0 : i1 to i32
    %c0_i32_0 = arith.constant 0 : i32
    %2 = arith.cmpi ne, %1, %c0_i32_0 : i32
    scf.if %2 {
      %cst_12 = arith.constant 0.000000e+00 : f32
      %25 = vector.broadcast %cst_12 : f32 to vector<8x128xf32>
      %c0_13 = arith.constant 0 : index
      %c0_14 = arith.constant 0 : index
      %26 = vector.load %arg9[%c0_13, %c0_14] : memref<8x128xf32, #tpu.memory_space<vmem>>, vector<8x128xf32>
      tpu.vector_store %arg9[%c0_13, %c0_14], %25 {strides = array<i32>} : memref<8x128xf32, #tpu.memory_space<vmem>>, vector<8x128xf32>,
    } else {
    }
    %c1_i32 = arith.constant 1 : i32
    %3 = arith.muli %arg0, %c1_i32 : i32
    %4 = arith.addi %3, %arg1 : i32
    %5 = tpu.iota {dimensions = array<i32: 0>} : vector<16x128xi32>
    %c16_i32 = arith.constant 16 : i32
    %6 = arith.muli %4, %c16_i32 : i32
    %7 = vector.broadcast %6 : i32 to vector<16x128xi32>
    %8 = arith.addi %7, %5 : vector<16x128xi32>
    %c16_i32_1 = arith.constant 16 : i32
    %9 = vector.broadcast %c16_i32_1 : i32 to vector<16x128xi32>
    %10 = arith.cmpi slt, %8, %9 : vector<16x128xi32>
    %c0 = arith.constant 0 : index
    %c0_2 = arith.constant 0 : index
    %11 = vector.load %arg6[%c0, %c0_2] : memref<16x128xf32, #tpu.memory_space<vmem>>, vector<16x128xf32>
    %c0_3 = arith.constant 0 : index
    %c0_4 = arith.constant 0 : index
    %12 = vector.load %arg7[%c0_3, %c0_4] : memref<16x128xf32, #tpu.memory_space<vmem>>, vector<16x128xf32>
    %13 = arith.subf %11, %12 : vector<16x128xf32>
    %14 = math.absf %13 : vector<16x128xf32>
    %cst = arith.constant 0.000000e+00 : f32
    %15 = vector.broadcast %cst : f32 to vector<16x128xf32>
    %16 = arith.select %10, %14, %15 : vector<16x128xi1>, vector<16x128xf32>
    %c0_5 = arith.constant 0 : index
    %c0_6 = arith.constant 0 : index
    %17 = vector.load %arg9[%c0_5, %c0_6] : memref<8x128xf32, #tpu.memory_space<vmem>>, vector<8x128xf32>
    %18 = vector.shape_cast %16 : vector<16x128xf32> to vector<2x8x128xf32>
    %cst_7 = arith.constant dense<0.000000e+00> : vector<8x128xf32>
    %19 = vector.multi_reduction <add>, %18, %cst_7 [0] : vector<2x8x128xf32> to vector<8x128xf32>
    %20 = arith.addf %17, %19 : vector<8x128xf32>
    %c0_8 = arith.constant 0 : index
    %c0_9 = arith.constant 0 : index
    %21 = vector.load %arg9[%c0_8, %c0_9] : memref<8x128xf32, #tpu.memory_space<vmem>>, vector<8x128xf32>
    tpu.vector_store %arg9[%c0_8, %c0_9], %20 {strides = array<i32>} : memref<8x128xf32, #tpu.memory_space<vmem>>, vector<8x128xf32>,
    %c0_i32_10 = arith.constant 0 : i32
    %22 = arith.cmpi eq, %arg1, %c0_i32_10 : i32
    %23 = arith.extui %22 : i1 to i32
    %c0_i32_11 = arith.constant 0 : i32
    %24 = arith.cmpi ne, %23, %c0_i32_11 : i32
    scf.if %24 {
      %c0_12 = arith.constant 0 : index
      %c0_13 = arith.constant 0 : index
      %25 = vector.load %arg9[%c0_12, %c0_13] : memref<8x128xf32, #tpu.memory_space<vmem>>, vector<8x128xf32>
      %cst_14 = arith.constant 0.0325520821 : f32
      %26 = vector.broadcast %cst_14 : f32 to vector<8x128xf32>
      %27 = arith.mulf %25, %26 : vector<8x128xf32>
      %c0_15 = arith.constant 0 : index
      %c0_16 = arith.constant 0 : index
      %28 = vector.load %arg2[%c0_15, %c0_16] : memref<8x128xf32, #tpu.memory_space<vmem>>, vector<8x128xf32>
      %c0_17 = arith.constant 0 : index
      %c0_18 = arith.constant 0 : index
      %29 = vector.load %arg3[%c0_17, %c0_18] : memref<8x128xf32, #tpu.memory_space<vmem>>, vector<8x128xf32>
      %30 = arith.subf %28, %29 : vector<8x128xf32>
      %31 = math.absf %30 : vector<8x128xf32>
      %cst_19 = arith.constant 1.000000e+00 : f32
      %32 = vector.broadcast %cst_19 : f32 to vector<8x128xf32>
      %33 = arith.cmpf olt, %31, %32 : vector<8x128xf32>
      %cst_20 = arith.constant 5.000000e-01 : f32
      %34 = vector.broadcast %cst_20 : f32 to vector<8x128xf32>
      %35 = arith.mulf %34, %30 : vector<8x128xf32>
      %36 = arith.mulf %35, %30 : vector<8x128xf32>
      %cst_21 = arith.constant 5.000000e-01 : f32
      %37 = vector.broadcast %cst_21 : f32 to vector<8x128xf32>
      %38 = arith.subf %31, %37 : vector<8x128xf32>
      %39 = arith.select %33, %36, %38 : vector<8x128xi1>, vector<8x128xf32>
      %40 = vector.shape_cast %39 : vector<8x128xf32> to vector<1x8x128xf32>
      %cst_22 = arith.constant dense<0.000000e+00> : vector<1xf32>
      %41 = vector.multi_reduction <add>, %40, %cst_22 [1, 2] : vector<1x8x128xf32> to vector<1xf32>
      %42 = vector.shape_cast %41 : vector<1xf32> to vector<1x1x1xf32>
      %43 = vector.extract %42[0, 0, 0] : f32 from vector<1x1x1xf32>
      %c0_23 = arith.constant 0 : index
      %c0_24 = arith.constant 0 : index
      %44 = vector.load %arg4[%c0_23, %c0_24] : memref<8x128xf32, #tpu.memory_space<vmem>>, vector<8x128xf32>
      %c0_25 = arith.constant 0 : index
      %c0_26 = arith.constant 0 : index
      %45 = vector.load %arg5[%c0_25, %c0_26] : memref<8x128xf32, #tpu.memory_space<vmem>>, vector<8x128xf32>
      %46 = arith.subf %44, %45 : vector<8x128xf32>
      %47 = arith.mulf %46, %46 : vector<8x128xf32>
      %48 = vector.shape_cast %47 : vector<8x128xf32> to vector<1x8x128xf32>
      %cst_27 = arith.constant dense<0.000000e+00> : vector<1xf32>
      %49 = vector.multi_reduction <add>, %48, %cst_27 [1, 2] : vector<1x8x128xf32> to vector<1xf32>
      %50 = vector.shape_cast %49 : vector<1xf32> to vector<1x1x1xf32>
      %51 = vector.extract %50[0, 0, 0] : f32 from vector<1x1x1xf32>
      %c0_i32_28 = arith.constant 0 : i32
      %52 = arith.cmpi eq, %arg0, %c0_i32_28 : i32
      %cst_29 = arith.constant 5.000000e-01 : f32
      %53 = arith.mulf %cst_29, %51 : f32
      %cst_30 = arith.constant 5.000000e-03 : f32
      %54 = arith.mulf %cst_30, %43 : f32
      %55 = arith.addf %53, %54 : f32
      %cst_31 = arith.constant 0.000000e+00 : f32
      %56 = arith.select %52, %55, %cst_31 : f32
      %57 = tpu.iota {dimensions = array<i32: 0>} : vector<8x128xi32>
      %58 = tpu.iota {dimensions = array<i32: 1>} : vector<8x128xi32>
      %c0_i32_32 = arith.constant 0 : i32
      %59 = vector.broadcast %c0_i32_32 : i32 to vector<8x128xi32>
      %60 = arith.cmpi eq, %57, %59 : vector<8x128xi32>
      %c0_i32_33 = arith.constant 0 : i32
      %61 = vector.broadcast %c0_i32_33 : i32 to vector<8x128xi32>
      %62 = arith.cmpi eq, %58, %61 : vector<8x128xi32>
      %63 = arith.andi %60, %62 : vector<8x128xi1>
      %cst_34 = arith.constant 0.000000e+00 : f32
      %64 = vector.broadcast %56 : f32 to vector<8x128xf32>
      %65 = vector.broadcast %cst_34 : f32 to vector<8x128xf32>
      %66 = arith.select %63, %64, %65 : vector<8x128xi1>, vector<8x128xf32>
      %67 = arith.addf %27, %66 : vector<8x128xf32>
      %c0_35 = arith.constant 0 : index
      %c0_36 = arith.constant 0 : index
      %c0_37 = arith.constant 0 : index
      %68 = vector.load %arg8[%c0_35, %c0_36, %c0_37] : memref<1x8x128xf32, #tpu.memory_space<vmem>>, vector<1x8x128xf32>
      %69 = vector.shape_cast %68 : vector<1x8x128xf32> to vector<8x128xf32>
      %70 = vector.shape_cast %67 : vector<8x128xf32> to vector<1x8x128xf32>
      tpu.vector_store %arg8[%c0_35, %c0_36, %c0_37], %70 {strides = array<i32>} : memref<1x8x128xf32, #tpu.memory_space<vmem>>, vector<1x8x128xf32>,
    } else {
    }
    return
  }
  func.func @transform_0(%arg0: i32, %arg1: i32) -> (i32, i32) {
    %c0_i32 = arith.constant 0 : i32
    %c0_i32_0 = arith.constant 0 : i32
    %c0_i32_1 = arith.constant 0 : i32
    return %c0_i32, %c0_i32_0 : i32, i32
  }
  func.func @transform_1(%arg0: i32, %arg1: i32) -> (i32, i32) {
    %c0_i32 = arith.constant 0 : i32
    %c0_i32_0 = arith.constant 0 : i32
    %c0_i32_1 = arith.constant 0 : i32
    return %c0_i32, %c0_i32_0 : i32, i32
  }
  func.func @transform_2(%arg0: i32, %arg1: i32) -> (i32, i32) {
    %c0_i32 = arith.constant 0 : i32
    %c0_i32_0 = arith.constant 0 : i32
    %c0_i32_1 = arith.constant 0 : i32
    return %c0_i32, %c0_i32_0 : i32, i32
  }
  func.func @transform_3(%arg0: i32, %arg1: i32) -> (i32, i32) {
    %c0_i32 = arith.constant 0 : i32
    %c0_i32_0 = arith.constant 0 : i32
    %c0_i32_1 = arith.constant 0 : i32
    return %c0_i32, %c0_i32_0 : i32, i32
  }
  func.func @transform_4(%arg0: i32, %arg1: i32) -> (i32, i32) {
    %c1_i32 = arith.constant 1 : i32
    %0 = arith.muli %arg0, %c1_i32 : i32
    %1 = arith.addi %0, %arg1 : i32
    %c0_i32 = arith.constant 0 : i32
    %2 = arith.minsi %1, %c0_i32 : i32
    %c0_i32_0 = arith.constant 0 : i32
    %c0_i32_1 = arith.constant 0 : i32
    return %2, %c0_i32_0 : i32, i32
  }
  func.func @transform_5(%arg0: i32, %arg1: i32) -> (i32, i32) {
    %c1_i32 = arith.constant 1 : i32
    %0 = arith.muli %arg0, %c1_i32 : i32
    %1 = arith.addi %0, %arg1 : i32
    %c0_i32 = arith.constant 0 : i32
    %2 = arith.minsi %1, %c0_i32 : i32
    %c0_i32_0 = arith.constant 0 : i32
    %c0_i32_1 = arith.constant 0 : i32
    return %2, %c0_i32_0 : i32, i32
  }
  func.func @transform_6(%arg0: i32, %arg1: i32) -> (i32, i32, i32) {
    %c0_i32 = arith.constant 0 : i32
    %c0_i32_0 = arith.constant 0 : i32
    %c0_i32_1 = arith.constant 0 : i32
    return %arg0, %c0_i32, %c0_i32_0 : i32, i32, i32
  }
}

</mosaic_0001>

<bundles_post_ra>
// kernel: tpu_custom_call.1
= control target key start
LH: loop header
LB: loop body
LE: loop exit
PB: predicated region body
PF: predicated region fallthrough
CT: control target
= control target key end

     0   :  { %s1368_s0 = inlined_call_operand.hbm [shape: f32[8,128], index: 0, kind: input, shape index: {}]   ;;  %s1369_s1 = inlined_call_operand.hbm [shape: f32[8,128], index: 1, kind: input, shape index: {}]   ;;  %s1370_s2 = inlined_call_operand.hbm [shape: f32[8,128], index: 2, kind: input, shape index: {}]   ;;  %s1371_s3 = inlined_call_operand.hbm [shape: f32[8,128], index: 3, kind: input, shape index: {}]   ;;  %s1372_s4 = inlined_call_operand.hbm [shape: f32[16,128], index: 4, kind: input, shape index: {}]   ;;  %s1373_s5 = inlined_call_operand.hbm [shape: f32[16,128], index: 5, kind: input, shape index: {}]   ;;  %s1374_s6 = inlined_call_operand.hbm [shape: f32[2,8,128], index: 6, kind: output, shape index: {}]  }
   0x1   :  { %1378 = sst [smem:[#allocation22_spill]] %s1368_s0 }
   0x2   :  { %1379 = sst [smem:[#allocation23_spill]] %s1369_s1 }
   0x3   :  { %1380 = sst [smem:[#allocation24_spill]] %s1370_s2 }
   0x4   :  { %1381 = sst [smem:[#allocation25_spill]] %s1372_s4 }
   0x5   :  { %11 = vsyncpa [#allocation4], 0 }
   0x6   :  { %12 = vsyncpa [#allocation7], 0 }
   0x7   :  { %13 = vsyncpa [#allocation10], 0 }
   0x8   :  { %14 = vsyncpa [#allocation5], 0 }
   0x9   :  { %16 = vsyncpa [#allocation5 + $0x1], 0  ;;  %s1144_s21 = smov 0   ;;  %s1146_s22 = smov 0  }
   0xa   :  { %s1148_s23 = smov 0   ;;  %s1150_s24 = smov 0  }
   0xb   :  { %s1152_s25 = smov 0   ;;  %s1154_s26 = smov 0  }
   0xc   :  { %s1156_s27 = smov 0   ;;  %s1158_s28 = smov 0  }
   0xd LB: > { %1382 = sst [smem:[#allocation19_spill]] %s1095_s27  ;;  %s1183_s29 = sadd.s32 4294967295, %s1099_s28   ;;  %s1099_s28 = sphi %s1158_s28, %s22_s28   ;;  %s1095_s27 = sphi %s1156_s27, %s1398_s27   ;;  %s1091_s26 = sphi %s1154_s26, %s1397_s26   ;;  %s1087_s25 = sphi %s1152_s25, %s1358_s25   ;;  %s1083_s24 = sphi %s1150_s24, %s1402_s24   ;;  %s1079_s23 = sphi %s1148_s23, %s1401_s23   ;;  %s1075_s22 = sphi %s1146_s22, %s1400_s22   ;;  %s1071_s21 = sphi %s1144_s21, %s1399_s21  }
   0xe   : > { %s637_s30 = sadd.s32 4294967294, %s1099_s28   ;;  %p144_p0 = scmp.ne.s32.totalorder %s1087_s25, %s1083_s24 }
   0xf   : > { %p145_p1 = scmp.eq.s32.totalorder %s1183_s29, 0  ;;  %s189_s7 = sadd.s32 1, %s1079_s23 }
  0x10   : > { %p199_p2 = scmp.ne.s32.totalorder %s1079_s23, %s1075_s22  ;;  %p200_p4 = scmp.eq.s32.totalorder %s1183_s29, 1 }
  0x11   : > { %p1193_p3 = por %p145_p1, %p144_p0  ;;  %p205_p5 = scmp.ne.s32.totalorder %s1075_s22, %s1071_s21 }
  0x12   : > { %p206_p6 = scmp.eq.s32.totalorder %s637_s30, 1  ;;  %p1200_p7 = por %p200_p4, %p199_p2 }
  0x13   : > { %p638_p8 = scmp.ge.s32.totalorder %s1099_s28, 1  ;;  %p213_p10 = scmp.lt.s32.totalorder %s1099_s28, 3 }
  0x14   : > { %p1205_p9 = por %p206_p6, %p205_p5  ;;  %s1386_s0 = sld [smem:[#allocation22_spill]] }
  0x15   : > { %p1213_p11 = pnand %p638_p8, %p213_p10  ;;  %p643_p12 = scmp.ge.s32.totalorder %s1099_s28, 2 }
  0x16   : > { %s1101_s15 = smov [#allocation3]   ;;  %s1388_s1 = sld [smem:[#allocation23_spill]] }
  0x17   : > { %p692_p13 = pneg %p1213_p11  ;;  %s227_s16 = sshll.u32 %s1101_s15, 4  ;;  %s228_s16 = int_to_ptr.vmem [resolvable:$true] %s227_s16 }
  0x18   : > { %s1102_s24 = smov [#allocation6]   ;;  %s34_s11 = sadd.s32 1, %s1095_s27 }
  0x19   : > { %p1225_p0 = pnand %p692_p13, %p145_p1  ;;  %s239_s30 = sshll.u32 %s1102_s24, 4  ;;  %s240_s30 = int_to_ptr.vmem [resolvable:$true] %s239_s30 }
  0x1a   : > { %s225_s13 = sshll.u32 %s1386_s0, 4  ;;  %p36_p2 = scmp.ge.s32.totalorder %s34_s11, 2  ;;  %s226_s13 = int_to_ptr.hbm [resolvable:$true] %s225_s13 }
  0x1b   : > { %695 = dma.hbm_to_vmem [thread:$0]  (!%p1225_p0), %s226_s13, 128, %s228_s16, [#allocation4]  }
  0x1c   : > { %s237_s19 = sshll.u32 %s1388_s1, 4  ;;  %s1404_s11 = smov (%p36_p2, %s34_s11), 0  ;;  %s238_s19 = int_to_ptr.hbm [resolvable:$true] %s237_s19 }
  0x1d   : > { %698 = dma.hbm_to_vmem [thread:$0]  (!%p1225_p0), %s238_s19, 128, %s240_s30, [#allocation7]  }
  0x1e   : > { %1390 = sst [smem:[#allocation20_spill]] %s1404_s11  ;;  %p1068_p4 = scmp.ne.s32.totalorder %s1087_s25, 0 }
  0x1f   : > { %p139_p5 = scmp.eq.s32.totalorder %s1099_s28, 0  ;;  %s186_s12 = ssub.s32 %s1095_s27, %s1404_s11 }
  0x20   : > { %p187_p8 = scmp.eq.s32.totalorder %s186_s12, 0  ;;  %p720_p10 = scmp.lt.s32.totalorder %s1099_s28, 2 }
  0x21   : > { %p140_p6 = por %p1068_p4, %p139_p5  ;;  %s274_s17 = sand.u32 1, %s1099_s28  }
  0x22   : > { %s1243_s15 = scalar_select %p187_p8, %s1079_s23, %s189_s7  }
  0x23   : > { %s1392_s4 = sld [smem:[#allocation25_spill]]  ;;  %s1103_s19 = smov [#allocation11]  }
  0x24   : > { %1391 = sst [smem:[#allocation21_spill]] %s1243_s15  ;;  %s289_s24 = sshll.u32 %s1103_s19, 4  ;;  %s290_s24 = int_to_ptr.vmem [resolvable:$true] %s289_s24 }
  0x25   : > { %p1250_p13 = pnand %p720_p10, %p140_p6  ;;  %s1394_s2 = sld [smem:[#allocation24_spill]] }
  0x26   : > { %s1257_s12 = scalar_lea.sflag [#allocation4], %s274_s17 }
  0x27   : > { %p868_p4 = pneg %p1250_p13 }
  0x29   : > { %s287_s16 = sshll.u32 %s1392_s4, 4  ;;  %s871_s0 = scalar_lea.hbm %s1392_s4, 16  ;;  %s288_s16 = int_to_ptr.hbm [resolvable:$true] %s287_s16 }
  0x2a   : > { %s864_s11 = sshra.s32 %s288_s16, 4  ;;  %s865_s11 = int_to_ptr.hbm [resolvable:$true] %s864_s11 }
  0x2b   : > { %s249_s7 = sshll.u32 %s1394_s2, 4  ;;  %s866_s18 = scalar_lea.hbm %s865_s11, 16  ;;  %s250_s7 = int_to_ptr.hbm [resolvable:$true] %s249_s7 }
  0x2c   : > { %p867_p2 = scmp.ne.s32.totalorder %s865_s11, %s866_s18  ;;  %p873_p8 = scmp.lt.s32.totalorder %s871_s0, %s866_s18 }
  0x2e   : > { %p869_p5 = pnand %p868_p4, %p867_p2 }
  0x30   : > { %p870_p6 = pneg %p869_p5 }
  0x32   : > { %p875_p10 = pnand %p873_p8, %p870_p6 }
  0x34   : > { %878 = shalt.err (!%p875_p10)
}
  0x35   : > { %s1377_s1 = smov 128   ;;  %s1105_s17 = smov 8  }
  0x36   : > { %708 = dma.hbm_to_vmem [thread:$0]  (!%p1250_p13), %s288_s16, 256, %s290_s24, %s1257_s12, %s1377_s1, %s1377_s1, %s1105_s17  }
  0x37   : > { %s261_s27 = sshll.u32 %s1371_s3, 4  ;;  %s1106_s13 = smov [#allocation8]   ;;  %s262_s27 = int_to_ptr.hbm [resolvable:$true] %s261_s27 }
  0x38   : > { %s251_s19 = sshll.u32 %s1106_s13, 4  ;;  %s1107_s18 = smov [#allocation9]   ;;  %s252_s19 = int_to_ptr.vmem [resolvable:$true] %s251_s19 }
  0x39   : > { %701 = dma.hbm_to_vmem [thread:$0]  (!%p1225_p0), %s250_s7, 128, %s252_s19, [#allocation7]  }
  0x3a   : > { %s263_s0 = sshll.u32 %s1107_s18, 4  ;;  %s312_s16 = sshll.u32 %s1373_s5, 4  ;;  %s264_s0 = int_to_ptr.vmem [resolvable:$true] %s263_s0  ;;  %s313_s16 = int_to_ptr.hbm [resolvable:$true] %s312_s16 }
  0x3b   : > { %704 = dma.hbm_to_vmem [thread:$0]  (!%p1225_p0), %s262_s27, 128, %s264_s0, [#allocation10]  }
  0x3c   : > { %s1108_s24 = smov [#allocation12]   ;;  %s954_s2 = sshra.s32 %s313_s16, 4  ;;  %s955_s2 = int_to_ptr.hbm [resolvable:$true] %s954_s2 }
  0x3d   : > { %s314_s1 = sshll.u32 %s1108_s24, 4  ;;  %s956_s11 = scalar_lea.hbm %s955_s2, 16  ;;  %s315_s1 = int_to_ptr.vmem [resolvable:$true] %s314_s1 }
  0x3e   : > { %p957_p2 = scmp.ne.s32.totalorder %s955_s2, %s956_s11  ;;  %s961_s27 = scalar_lea.hbm %s1373_s5, 16 }
  0x3f   : > { %p963_p0 = scmp.lt.s32.totalorder %s961_s27, %s956_s11 }
  0x40   : > { %p959_p5 = pnand %p957_p2, %p868_p4 }
  0x42   : > { %p960_p6 = pneg %p959_p5 }
  0x44   : > { %p965_p8 = pnand %p963_p0, %p960_p6 }
  0x46   : > { %968 = shalt.err (!%p965_p8)
}
  0x47   : > { %s1395_s4 = smov 128   ;;  %326 = sbr.rel (%p1213_p11) target bundleno = 291 (0x123), region = 44 }
  0x48   : > { %711 = dma.hbm_to_vmem [thread:$0]  (!%p1250_p13), %s313_s16, 256, %s315_s1, %s1257_s12, %s1395_s4, %s1395_s4, %s1105_s17  }
  0x4c   : > { %1049 = dma.done.wait (%p145_p1), [#allocation4], 128  }
  0x4d   : > { %1051 = vsyncadd (%p145_p1), [#allocation4], 4294967168 }
  0x4e   : > { %1053 = dma.done.wait (%p145_p1), [#allocation7], 256  }
  0x4f   : > { %1055 = vsyncadd (%p145_p1), [#allocation7], 4294967040 }
  0x50   : > { %1057 = dma.done.wait (%p145_p1), [#allocation10], 128  }
  0x51   : > { %1059 = vsyncadd (%p145_p1), [#allocation10], 4294967168  ;;  %s348_s14 = sand.u32 1, %s1183_s29   ;;  %s350_s20 = sand.u32 1, %s1087_s25  }
  0x52   : > { %s1311_s15 = sshll.u32 %s350_s20, 4  ;;  %s349_s30 = scalar_lea.sflag [#allocation4], %s348_s14 }
  0x53   : > { %s352_s12 = scalar_lea.vmem [#allocation11], %s1311_s15 }
  0x54   : > { %1061 = dma.done.wait (%p1193_p3), %s349_s30, 512  }
  0x55   : > { %1063 = vsyncadd (%p1193_p3), %s349_s30, 4294966784  ;;  %v439_v0 = vld [vmem:[#allocation3] sm:$0xff]  ;;  %v440_v1 = vld [vmem:[#allocation6] sm:$0xff]  ;;  %v411_v26 = vlaneseq  ;;  %s658_s29 = sshll.u32 %s1091_s26, 4  ;;  %s362_s8 = scalar_lea.vmem [#allocation12], %s1311_s15 }
  0x56   : > { %v441_v2 = vsub.f32 %v439_v0, %v440_v1  ;;  %v457_v7 = vld [vmem:[#allocation8] sm:$0xff]  ;;  %v458_v8 = vld [vmem:[#allocation9] sm:$0xff]  ;;  %v415_v33 = vstv %s658_s29  ;;  %s394_s1 = sand.u32 1, %s1075_s22   ;;  %s661_s18 = sshll.u32 %s1091_s26, 3 }
  0x57   : > { %v459_v10 = vsub.f32 %v457_v7, %v458_v8  ;;  %v412_v27 = vshrl.u32 %v411_v26, 7  ;;  %v420_v28 = vld [vmem:[%s352_s12] sm:$0xff]  ;;  %v421_v30 = vld [vmem:[%s352_s12 + $0x8] sm:$0xff]  ;;  %v476_v42 = vand.u32 127, %v411_v26  ;;  %s657_s19 = sshll.u32 %s394_s1, 3  ;;  %p470_p1 = scmp.eq.s32.totalorder %s1091_s26, 0 }
  0x58   : > { %v442_v3 = vand.u32 2147483647, %v441_v2  ;;  %v444_v4 = vmul.f32 0.5, %v441_v2  ;;  %v422_v31 = vld [vmem:[%s362_s8] sm:$0xff]  ;;  %v423_v32 = vld [vmem:[%s362_s8 + $0x8] sm:$0xff]  ;;  %s495_s13 = scalar_lea.hbm %s1374_s6, %s661_s18  ;;  %s396_s27 = scalar_lea.vmem [#allocation13], %s657_s19 }
  0x59   : > { %v460_v11 = vmul.f32 %v459_v10, %v459_v10  ;;  %v413_v29 = vadd.s32 8, %v412_v27  ;;  %v424_v34 = vsub.f32 %v420_v28, %v422_v31  ;;  %v425_v35 = vsub.f32 %v421_v30, %v423_v32  ;;  %s497_s4 = sshll.u32 %s396_s27, 4  ;;  %s499_s14 = sshll.u32 %s495_s13, 4  ;;  %s498_s4 = int_to_ptr.vmem [resolvable:$true] %s497_s4  ;;  %s500_s14 = int_to_ptr.hbm [resolvable:$true] %s499_s14 }
  0x5a   : > { %vm443_vm0 = vcmp.lt.f32.partialorder %v442_v3, 1.0  ;;  %v445_v5 = vmul.f32 %v444_v4, %v441_v2  ;;  %v659_v6 = vadd.f32 -0.5, %v442_v3  ;;  %v416_v36 = vadd.s32 %v415_v33, %v412_v27  ;;  %s485_s26 = scalar_lea.sflag [#allocation5], %s394_s1  ;;  %s998_s20 = sshra.s32 %s500_s14, 4  ;;  %s999_s20 = int_to_ptr.hbm [resolvable:$true] %s998_s20 }
  0x5b   : > { %v417_v37 = vadd.s32 %v415_v33, %v413_v29  ;;  %v426_v38 = vand.u32 2147483647, %v424_v34  ;;  %v427_v39 = vand.u32 2147483647, %v425_v35  ;;  %vm477_vm3 = vcmp.eq.s32.totalorder %v412_v27, 0  ;;  %s1000_s15 = scalar_lea.hbm %s999_s20, 8  ;;  %p1005_p4 = scmp.lt.s32.totalorder %s999_s20, %s1374_s6 }
  0x5c   : > { %v447_v9 = vsel %vm443_vm0, %v445_v5, %v659_v6  ;;  %vm418_vm1 = vcmp.lt.s32.totalorder %v416_v36, 16  ;;  %vm478_vm4 = vcmp.eq.s32.totalorder %v476_v42, 0  ;;  %p1001_p3 = scmp.ne.s32.totalorder %s999_s20, %s1000_s15  ;;  %s1004_s29 = scalar_lea.hbm %s1374_s6, 16 }
  0x5d   : > { %448 = vadd.xlane.f32.xlu0 %v447_v9  ;;  %vm419_vm2 = vcmp.lt.s32.totalorder %v417_v37, 16  ;;  %v428_v40 = vsel %vm418_vm1, %v426_v38, 0.0  ;;  %vm479_vm5 = vmand %vm477_vm3, %vm478_vm4  ;;  %p1006_p10 = scmp.lt.s32.totalorder %s1004_s29, %s1000_s15 }
  0x5e   : > { %v429_v41 = vsel %vm419_vm2, %v427_v39, 0.0  ;;  %p1002_p11 = pnand %p1001_p3, %p1200_p7 }
  0x5f   : > { %v431_v43 = vadd.f32 %v429_v41, %v428_v40  ;;  %p1007_p2 = por %p1006_p10, %p1005_p4 }
  0x60   : > { %p1003_p13 = pneg %p1002_p11 }
  0x61   : > { %v438_v44 = vmul.f32 0.032552082, %v431_v43 }
  0x62   : > { %p1008_p5 = pnand %p1007_p2, %p1003_p13 }
  0x65   : > { %461 = vadd.xlane.f32.xlu0 %v460_v11 }
  0xd0   : > { %v449_v12 = vpop.xlane.xlu0 %448 }
  0xd1   : > { %v450_v13 = vrot.slane %v449_v12, 4 }
  0xd3   : > { %v451_v14 = vadd.f32 %v450_v13, %v449_v12 }
  0xd5   : > { %v452_v15 = vrot.slane %v451_v14, 2 }
  0xd7   : > { %v453_v16 = vadd.f32 %v452_v15, %v451_v14 }
  0xd8   : > { %v462_v17 = vpop.xlane.xlu0 %461 }
  0xd9   : > { %v463_v18 = vrot.slane %v462_v17, 4  ;;  %v454_v19 = vrot.slane %v453_v16, 1 }
  0xdb   : > { %v464_v20 = vadd.f32 %v463_v18, %v462_v17  ;;  %v455_v21 = vadd.f32 %v454_v19, %v453_v16 }
  0xdd   : > { %v465_v22 = vrot.slane %v464_v20, 2  ;;  %666 = vpush %v455_v21 }
  0xdf   : > { %v466_v23 = vadd.f32 %v465_v22, %v464_v20 }
  0xe1   : > { %v467_v24 = vrot.slane %v466_v23, 1 }
  0xe3   : > { %v468_v25 = vadd.f32 %v467_v24, %v466_v23 }
  0xe5   : > { %668 = vpush %v468_v25 }
 0x10e   : > { %s667_s17 = spop %666 }
 0x10f   : > { %s472_s0 = smul.f32 0.005, %s667_s17 }
 0x116   : > { %s669_s16 = spop %668 }
 0x117   : > { %s471_s24 = smul.f32 0.5, %s669_s16 }
 0x119   : > { %s473_s2 = sadd.f32 %s472_s0, %s471_s24 }
 0x11b   : > { %s1406_s2 = smov (!%p470_p1, %s473_s2), 0.0 }
 0x11c   : > { %v480_v45 = vstv %s1406_s2 }
 0x11d   : > { %v481_v46 = vsel %vm479_vm5, %v480_v45, 0.0 }
 0x11e   : > { %v482_v47 = vadd.f32 %v481_v46, %v438_v44 }
 0x120   : > { %483 = vst [vmem:[%s396_s27] sm:$0xff] %v482_v47 }
 0x121   : > { %1011 = shalt.err (!%p1008_p5)
}
 0x122   : > { %690 = dma.vmem_to_hbm [thread:$0]  (%p1200_p7), %s498_s4, 128, %s500_s14, %s485_s26  }
 0x123 PF: > { %s511_s1 = sand.u32 1, %s1071_s21   ;;  %p713_p6 = pnand %p643_p12, %p1205_p9 }
 0x124   : > { %s512_s19 = scalar_lea.sflag [#allocation5], %s511_s1 }
 0x125   : > { %p714_p0 = pneg %p713_p6 }
 0x127   : > { %1065 = dma.done.wait (%p714_p0), %s512_s19, 128  }
 0x128   : > { %1067 = vsyncadd (%p714_p0), %s512_s19, 4294967168  ;;  %s22_s28 = sadd.s32 1, %s1099_s28   ;;  %s1396_s18 = sld [smem:[#allocation21_spill]] }
 0x129   : > { %p19_p8 = scmp.ge.s32.totalorder %s22_s28, 4   ;;  %s1397_s26 = sld [smem:[#allocation19_spill]] }
 0x12a   : > { %s1398_s27 = sld [smem:[#allocation20_spill]]  ;;  %s1399_s21 = smov %s1075_s22 }
 0x12b   : > { %s1400_s22 = smov %s1079_s23  ;;  %s1402_s24 = smov %s1087_s25 }
 0x12c   : > { %s1358_s25 = smov 0   ;;  %21 = sbr.rel (!%p19_p8) target bundleno = 13 (0xd), region = 123 }
 0x12e   : > { %s1401_s23 = smov %s1396_s18 }
 0x131   :  { %518 = vsyncpa [#allocation4], 1 }
 0x132   :  { %520 = vsyncpa [#allocation4 + $0x1], 1 }
 0x133   :  { %521 = vsyncpa [#allocation7], 1 }
 0x134   :  { %522 = vsyncpa [#allocation10], 1 }
 0x135   :  { %523 = vsyncpa [#allocation5], 1 }
 0x136   :  { %525 = vsyncpa [#allocation5 + $0x1], 1 }

</bundles_post_ra>
